<compile_context>
chip_gen: v5e
topology: v5e:2x2
jax: 0.10.0
libtpu: 0.0.40
codegen_flags: <defaults>
</compile_context>

<pallas_src>
import jax
import jax.numpy as jnp
from jax.experimental import pallas as pl
from jax.experimental.pallas import tpu as pltpu

_LANES = 128            # vreg lane width
_MAX_TILE_ROWS = 1024   # 1024 x 128 x 4 B = 512 KiB per f32 operand per grid step


def _round_up(x, m):
    return (x + m - 1) // m * m


def _bias_add_kernel(u_ref, i_ref, o_ref):
    """Fused add over one lane-dense batch tile.

    u_ref, i_ref, o_ref: (tile_rows, 128) float32 in VMEM.
    (global_bias is already folded into u_ref on the XLA side.)
    """
    o_ref[...] = u_ref[...] + i_ref[...]


@jax.jit
def bias_forward(u_id, i_id, user_bias_w, item_bias_w, global_bias):
    """user_bias_w: (user_size, 1), item_bias_w: (item_size, 1), global_bias: (1,)."""
    batch = u_id.shape[0]
    user_size = user_bias_w.shape[0]
    item_size = item_bias_w.shape[0]

    # --- Lane-dense tiling of the batch -----------------------------------
    rows = _round_up(pl.cdiv(batch, _LANES), 8)      # sublane multiple of 8
    n_tiles = pl.cdiv(rows, _MAX_TILE_ROWS)          # cap per-step VMEM footprint
    if rows >= 16:
        n_tiles = max(n_tiles, 2)                    # >=2 steps so v7x megacore splits them
    n_tiles = max(n_tiles, 1)
    tile_rows = _round_up(pl.cdiv(rows, n_tiles), 8)
    rows = tile_rows * n_tiles                       # minimal padding (multiple of 8)
    padded = rows * _LANES

    # --- Gather (XLA side): reads only the B touched rows of each table. ---
    # Pad/reshape the cheap int32 ids once; the gather then writes the bias
    # values directly in the (rows, 128) layout the kernel consumes.
    u_idx = jnp.clip(u_id.astype(jnp.int32), 0, user_size - 1)
    i_idx = jnp.clip(i_id.astype(jnp.int32), 0, item_size - 1)
    u_idx2 = jnp.pad(u_idx, (0, padded - batch)).reshape(rows, _LANES)
    i_idx2 = jnp.pad(i_idx, (0, padded - batch)).reshape(rows, _LANES)

    g = global_bias.reshape(()).astype(jnp.float32)
    u2 = user_bias_w.astype(jnp.float32)[u_idx2, 0] + g   # (rows, 128), +g fuses into gather
    i2 = item_bias_w.astype(jnp.float32)[i_idx2, 0]       # (rows, 128)

    out2 = pl.pallas_call(
        _bias_add_kernel,
        out_shape=jax.ShapeDtypeStruct((rows, _LANES), jnp.float32),
        grid=(n_tiles,),
        in_specs=[
            pl.BlockSpec((tile_rows, _LANES), lambda r: (r, 0)),   # u_b (+g) tile
            pl.BlockSpec((tile_rows, _LANES), lambda r: (r, 0)),   # i_b tile
        ],
        out_specs=pl.BlockSpec((tile_rows, _LANES), lambda r: (r, 0)),
        compiler_params=pltpu.CompilerParams(
            dimension_semantics=("parallel",),
            allow_input_fusion=[True, True],          # let gather/pad fuse into input DMAs
            vmem_limit_bytes=32 * 1024 * 1024,        # explicit headroom (v5e default is 16 MiB)
        ),
    )(u2, i2)

    return out2.reshape(-1)[:batch]


if __name__ == "__main__":
    # Small, deterministic setup consistent with the module's __init__.
    user_size = 32
    item_size = 48
    rating_mean = 3.5

    key = jax.random.PRNGKey(0)
    k_u, k_i, k_uid, k_iid = jax.random.split(key, 4)

    # nn.Embedding(user_size, 1) weights, normal_(0, 0.1)
    user_bias_w = 0.1 * jax.random.normal(k_u, (user_size, 1), dtype=jnp.float32)
    item_bias_w = 0.1 * jax.random.normal(k_i, (item_size, 1), dtype=jnp.float32)
    global_bias = jnp.array([rating_mean], dtype=jnp.float32)

    def reference(u_id, i_id):
        return user_bias_w[u_id].reshape(-1) + item_bias_w[i_id].reshape(-1) + global_bias

    # Test 1: tiny batch (single tile).
    batch = 8
    u_id = jax.random.randint(k_uid, (batch,), 0, user_size, dtype=jnp.int32)
    i_id = jax.random.randint(k_iid, (batch,), 0, item_size, dtype=jnp.int32)
    out = jax.block_until_ready(bias_forward(u_id, i_id, user_bias_w, item_bias_w, global_bias))
    assert out.shape == (batch,)
    assert jnp.allclose(out, reference(u_id, i_id), atol=1e-6)

    # Test 2: batch large enough to exercise the multi-tile grid + padding.
    batch2 = 9000
    k_uid2, k_iid2 = jax.random.split(jax.random.PRNGKey(1))
    u_id2 = jax.random.randint(k_uid2, (batch2,), 0, user_size, dtype=jnp.int32)
    i_id2 = jax.random.randint(k_iid2, (batch2,), 0, item_size, dtype=jnp.int32)
    out2 = jax.block_until_ready(bias_forward(u_id2, i_id2, user_bias_w, item_bias_w, global_bias))
    assert out2.shape == (batch2,)
    assert jnp.allclose(out2, reference(u_id2, i_id2), atol=1e-6)

    print("KERNEL_OK")
</pallas_src>

<mosaic_0001>
module attributes {stable_mosaic.version = 11 : i64} {
  func.func @_bias_add_kernel(%arg0: i32, %arg1: memref<8x128xf32, #tpu.memory_space<vmem>>, %arg2: memref<8x128xf32, #tpu.memory_space<vmem>>, %arg3: memref<8x128xf32, #tpu.memory_space<vmem>>) attributes {dimension_semantics = [#tpu.dimension_semantics<parallel>], iteration_bounds = array<i64: 1>, scalar_prefetch = 0 : i64, scratch_operands = 0 : i64, tpu.core_type = #tpu.core_type<tc>, window_params = [{transform_indices = @transform_0, window_bounds = array<i64: 8, 128>}, {transform_indices = @transform_1, window_bounds = array<i64: 8, 128>}, {transform_indices = @transform_2, window_bounds = array<i64: 8, 128>}]} {
    %c0 = arith.constant 0 : index
    %c0_0 = arith.constant 0 : index
    %0 = vector.load %arg1[%c0, %c0_0] : memref<8x128xf32, #tpu.memory_space<vmem>>, vector<8x128xf32>
    %c0_1 = arith.constant 0 : index
    %c0_2 = arith.constant 0 : index
    %1 = vector.load %arg2[%c0_1, %c0_2] : memref<8x128xf32, #tpu.memory_space<vmem>>, vector<8x128xf32>
    %2 = arith.addf %0, %1 : vector<8x128xf32>
    %c0_3 = arith.constant 0 : index
    %c0_4 = arith.constant 0 : index
    %3 = vector.load %arg3[%c0_3, %c0_4] : memref<8x128xf32, #tpu.memory_space<vmem>>, vector<8x128xf32>
    tpu.vector_store %arg3[%c0_3, %c0_4], %2 {strides = array<i32>} : memref<8x128xf32, #tpu.memory_space<vmem>>, vector<8x128xf32>,
    return
  }
  func.func @transform_0(%arg0: i32) -> (i32, i32) {
    %c0_i32 = arith.constant 0 : i32
    %c0_i32_0 = arith.constant 0 : i32
    return %arg0, %c0_i32 : i32, i32
  }
  func.func @transform_1(%arg0: i32) -> (i32, i32) {
    %c0_i32 = arith.constant 0 : i32
    %c0_i32_0 = arith.constant 0 : i32
    return %arg0, %c0_i32 : i32, i32
  }
  func.func @transform_2(%arg0: i32) -> (i32, i32) {
    %c0_i32 = arith.constant 0 : i32
    %c0_i32_0 = arith.constant 0 : i32
    return %arg0, %c0_i32 : i32, i32
  }
}

</mosaic_0001>

<bundles_post_ra>
// kernel: bias_forward.2
= control target key start
LH: loop header
LB: loop body
LE: loop exit
PB: predicated region body
PF: predicated region fallthrough
CT: control target
= control target key end

     0   :  { %s65_s0 = inlined_call_operand.vmem [shape: f32[1024], index: 0, kind: input, shape index: {}]   ;;  %s66_s1 = inlined_call_operand.vmem [shape: f32[1024], index: 1, kind: input, shape index: {}]   ;;  %s67_s2 = inlined_call_operand.<no memory space> [shape: f32[], index: 2, kind: input, shape index: {}]   ;;  %s68_s3 = inlined_call_operand.vmem [shape: f32[8,128], index: 3, kind: output, shape index: {}]  }
   0x1   :  { %v8_v0 = vstv %s67_s2  ;;  %v13_v1 = vld [vmem:[%s66_s1] sm:$0xff] }
   0x2   :  { %v21_v2 = vld [vmem:[%s65_s0] sm:$0xff]  ;;  %v16_v3 = vadd.f32 %v13_v1, %v8_v0 }
   0x4   :  { %v27_v4 = vadd.f32 %v21_v2, %v16_v3 }
   0x6   :  { %28 = vst [vmem:[%s68_s3] sm:$0xff] %v27_v4 }

</bundles_post_ra>
